<compile_context>
chip_gen: v5e
topology: v5e:2x2
jax: 0.10.0
libtpu: 0.0.40
codegen_flags: <defaults>
</compile_context>

<pallas_src>
import functools

import jax
import jax.numpy as jnp
from jax.experimental import pallas as pl
from jax.experimental.pallas import tpu as pltpu


def _round_up(a: int, m: int) -> int:
    return (a + m - 1) // m * m


def _pad2(a, rows: int, cols: int):
    r, c = a.shape
    if r == rows and c == cols:
        return a
    return jnp.pad(a, ((0, rows - r), (0, cols - c)))


def _patch_proj_kernel(x_ref, w_ref, b_ref, o_ref):
    # x_ref: (tm, Kp) bf16 patches; w_ref: (Kp, tn) bf16 weights; b_ref: (1, tn) f32 bias
    acc = jnp.dot(x_ref[...], w_ref[...], preferred_element_type=jnp.float32)
    o_ref[...] = acc + b_ref[...]


def patch_embed(x, weight, bias, *, tile_m=512, tile_n=None):
    """Conv2d(in_chans -> embed_dim, kernel=P, stride=P, padding=0) on NCHW input."""
    assert tile_m % 16 == 0, "tile_m must be a multiple of 16 (bf16 sublane packing)"
    assert tile_n is None or tile_n % 128 == 0
    B, C, H, W = x.shape
    E, Cw, P, Pw = weight.shape
    assert Cw == C and Pw == P
    assert H % P == 0 and W % P == 0, "H/W must be divisible by the patch size"
    Ho, Wo = H // P, W // P
    M, K = B * Ho * Wo, C * P * P

    # im2col for non-overlapping patches: pure layout, done in bf16 so the extra
    # HBM pass outside the kernel moves half the bytes.
    patches = (x.astype(jnp.bfloat16)
                 .reshape(B, C, Ho, P, Wo, P)
                 .transpose(0, 2, 4, 1, 3, 5)
                 .reshape(M, K))
    wmat = weight.astype(jnp.bfloat16).reshape(E, K).T      # (K, E), right-multiply layout

    # --- Tile selection ----------------------------------------------------
    Kp = _round_up(K, 128)

    # Embed (N) axis: default to one full-E tile (256-aligned for the 2x256^2 MXU on
    # v6e/v7x), capped at 2048 so the resident weight block stays a few MB at most.
    if tile_n is None:
        tn = min(_round_up(E, 256), 2048)
    else:
        tn = min(tile_n, _round_up(E, 128))
    Ep = _round_up(E, tn)

    # Patch-row (M) axis: 16-aligned for bf16; ensure >=2 tiles when M allows so both
    # v7x TensorCores get work (no-op on v5e/v6e).
    tm = min(tile_m, _round_up(M, 16))
    if _round_up(M, tm) // tm < 2 and M > 16:
        tm = _round_up((M + 1) // 2, 16)
    Mp = _round_up(M, tm)

    x_p = _pad2(patches, Mp, Kp)
    w_p = _pad2(wmat, Kp, Ep)
    b_p = _pad2(bias.astype(jnp.float32).reshape(1, E), 1, Ep)

    # Right-size the VMEM limit from the actual per-step footprint (+ headroom).
    per_step = (2 * tm * Kp * 2      # x block, double-buffered, bf16
                + 2 * Kp * tn * 2    # weight block (resident, but 2 buffers allocated)
                + 2 * 1 * tn * 4     # bias block
                + 2 * tm * tn * 4)   # f32 output block
    vmem_limit = min(max(per_step + (8 << 20), 16 << 20), 56 << 20)

    # Grid: embed-column tiles OUTER, patch-row tiles INNER.  For a fixed column tile
    # the weight / bias block indices never change, so they are fetched from HBM once
    # and stay VMEM-resident across every row tile.
    out = pl.pallas_call(
        _patch_proj_kernel,
        out_shape=jax.ShapeDtypeStruct((Mp, Ep), jnp.float32),
        grid=(Ep // tn, Mp // tm),
        in_specs=[
            pl.BlockSpec((tm, Kp), lambda j, i: (i, 0)),   # patch-row tile, full K
            pl.BlockSpec((Kp, tn), lambda j, i: (0, j)),   # weight column tile (resident)
            pl.BlockSpec((1, tn), lambda j, i: (0, j)),    # bias column tile (resident)
        ],
        out_specs=pl.BlockSpec((tm, tn), lambda j, i: (i, j)),
        compiler_params=pltpu.CompilerParams(
            dimension_semantics=("parallel", "parallel"),
            vmem_limit_bytes=vmem_limit,
        ),
    )(x_p, w_p, b_p)

    # (Mp, Ep) -> (B, E, Ho, Wo), dropping padding; matches Conv2d NCHW output.
    # (Callers wanting (B, Ho*Wo, E) tokens can skip this transpose themselves.)
    return out[:M, :E].reshape(B, Ho, Wo, E).transpose(0, 3, 1, 2)


if __name__ == "__main__":
    # Small PatchEmbed: in_chans=3, embed_dim=192, kernel_size=stride=8, padding=0.
    B, C, H, W = 2, 3, 32, 32
    P, E = 8, 192

    key = jax.random.PRNGKey(0)
    kx, kw, kb = jax.random.split(key, 3)
    x = jax.random.normal(kx, (B, C, H, W), dtype=jnp.float32)
    w = jax.random.normal(kw, (E, C, P, P), dtype=jnp.float32) * 0.05
    b = jax.random.normal(kb, (E,), dtype=jnp.float32) * 0.05

    # Small tile_m so the test exercises a multi-tile M grid plus K/E padding paths.
    fn = jax.jit(functools.partial(patch_embed, tile_m=16))
    out = jax.block_until_ready(fn(x, w, b))

    # Reference: plain conv on bf16-rounded operands (matches the kernel's bf16
    # operands / f32 accumulation).
    x_bf = x.astype(jnp.bfloat16).astype(jnp.float32)
    w_bf = w.astype(jnp.bfloat16).astype(jnp.float32)
    ref = jax.lax.conv_general_dilated(
        x_bf, w_bf, window_strides=(P, P), padding="VALID",
        dimension_numbers=("NCHW", "OIHW", "NCHW"),
        precision=jax.lax.Precision.HIGHEST) + b.reshape(1, E, 1, 1)
    ref = jax.block_until_ready(ref)

    assert out.shape == (B, E, H // P, W // P)
    assert jnp.allclose(out, ref, atol=2e-3, rtol=2e-3), "mismatch vs conv reference"

    print("KERNEL_OK")
</pallas_src>

<mosaic_0001>
module attributes {stable_mosaic.version = 11 : i64} {
  func.func @_patch_proj_kernel(%arg0: i32, %arg1: i32, %arg2: memref<16x256xbf16, #tpu.memory_space<vmem>>, %arg3: memref<256x256xbf16, #tpu.memory_space<vmem>>, %arg4: memref<1x256xf32, #tpu.memory_space<vmem>>, %arg5: memref<16x256xf32, #tpu.memory_space<vmem>>) attributes {dimension_semantics = [#tpu.dimension_semantics<parallel>, #tpu.dimension_semantics<parallel>], iteration_bounds = array<i64: 1, 2>, scalar_prefetch = 0 : i64, scratch_operands = 0 : i64, tpu.core_type = #tpu.core_type<tc>, window_params = [{transform_indices = @transform_0, window_bounds = array<i64: 16, 256>}, {transform_indices = @transform_1, window_bounds = array<i64: 256, 256>}, {transform_indices = @transform_2, window_bounds = array<i64: 1, 256>}, {transform_indices = @transform_3, window_bounds = array<i64: 16, 256>}]} {
    %c0 = arith.constant 0 : index
    %c0_0 = arith.constant 0 : index
    %0 = vector.load %arg2[%c0, %c0_0] : memref<16x256xbf16, #tpu.memory_space<vmem>>, vector<16x256xbf16>
    %c0_1 = arith.constant 0 : index
    %c0_2 = arith.constant 0 : index
    %1 = vector.load %arg3[%c0_1, %c0_2] : memref<256x256xbf16, #tpu.memory_space<vmem>>, vector<256x256xbf16>
    %cst = arith.constant dense<0.000000e+00> : vector<16x256xf32>
    %2 = tpu.matmul %0, %1, %cst {dimension_numbers = #tpu.dot_dimension_numbers<[1], [0], [0], [1], [0, 0, 1, 1], [], []>} : vector<16x256xbf16>, vector<256x256xbf16>, vector<16x256xf32> -> vector<16x256xf32>
    %c0_3 = arith.constant 0 : index
    %c0_4 = arith.constant 0 : index
    %3 = vector.load %arg4[%c0_3, %c0_4] : memref<1x256xf32, #tpu.memory_space<vmem>>, vector<1x256xf32>
    %4 = vector.broadcast %3 : vector<1x256xf32> to vector<16x256xf32>
    %5 = arith.addf %2, %4 : vector<16x256xf32>
    %c0_5 = arith.constant 0 : index
    %c0_6 = arith.constant 0 : index
    %6 = vector.load %arg5[%c0_5, %c0_6] : memref<16x256xf32, #tpu.memory_space<vmem>>, vector<16x256xf32>
    tpu.vector_store %arg5[%c0_5, %c0_6], %5 {strides = array<i32>} : memref<16x256xf32, #tpu.memory_space<vmem>>, vector<16x256xf32>,
    return
  }
  func.func @transform_0(%arg0: i32, %arg1: i32) -> (i32, i32) {
    %c0_i32 = arith.constant 0 : i32
    %c0_i32_0 = arith.constant 0 : i32
    return %arg1, %c0_i32 : i32, i32
  }
  func.func @transform_1(%arg0: i32, %arg1: i32) -> (i32, i32) {
    %c0_i32 = arith.constant 0 : i32
    %c0_i32_0 = arith.constant 0 : i32
    return %c0_i32, %arg0 : i32, i32
  }
  func.func @transform_2(%arg0: i32, %arg1: i32) -> (i32, i32) {
    %c0_i32 = arith.constant 0 : i32
    %c0_i32_0 = arith.constant 0 : i32
    return %c0_i32, %arg0 : i32, i32
  }
  func.func @transform_3(%arg0: i32, %arg1: i32) -> (i32, i32) {
    %c0_i32 = arith.constant 0 : i32
    return %arg1, %arg0 : i32, i32
  }
}

</mosaic_0001>

<bundles_post_ra>
// kernel: patch_embed.1
= control target key start
LH: loop header
LB: loop body
LE: loop exit
PB: predicated region body
PF: predicated region fallthrough
CT: control target
= control target key end

     0   :  { %s879_s12 = smov 0   ;;  %s881_s13 = smov 0   ;;  %s1114_s0 = inlined_call_operand.vmem [shape: bf16[32,256], index: 0, kind: input, shape index: {}]   ;;  %s1115_s1 = inlined_call_operand.vmem [shape: bf16[256,256], index: 1, kind: input, shape index: {}]   ;;  %s1116_s2 = inlined_call_operand.vmem [shape: f32[1,256], index: 2, kind: input, shape index: {}]   ;;  %s1117_s3 = inlined_call_operand.vmem [shape: f32[32,256], index: 3, kind: output, shape index: {}]  }
   0x1   :  { %s883_s14 = smov 0  }
   0x2 LB: > { %s22_s15 = sadd.s32 1, %s853_s13  ;;  %p630_p0 = scmp.ge.s32.totalorder %s857_s14, 1  ;;  %s857_s14 = sphi %s883_s14, %s13_s14   ;;  %s853_s13 = sphi %s881_s13, %s1119_s13   ;;  %s849_s12 = sphi %s879_s12, %s1118_s12  }
   0x3   : > { %p23_p1 = scmp.ge.s32.totalorder %s22_s15, 2  ;;  %p174_p2 = scmp.lt.s32.totalorder %s857_s14, 3 }
   0x5   : > { %s1121_s15 = smov (%p23_p1, %s22_s15), 0  ;;  %p175_p3 = pnand %p630_p0, %p174_p2 }
   0x6   : > { %s631_s5 = sshll.u32 (!%p175_p3), %s849_s12, 1 }
   0x7   : > { %178 = sbr.rel (%p175_p3) target bundleno = 192 (0xc0), region = 32  ;;  %p214_p4 = scmp.lt.s32.totalorder (!%p175_p3), %s631_s5, 3 }
   0xc   : > { %v703_v0 = vld [vmem:[%s1115_s1 + $0x70] sm:$0xf]  ;;  %v794_v1 = vld [vmem:[%s1115_s1 + $0x74] sm:$0xf0]  ;;  %v793_v5 = vld [vmem:[%s1115_s1 + $0x74] sm:$0xf] }
   0xd   : > { %v767_v2 = vld [vmem:[%s1115_s1 + $0xf0] sm:$0xf]  ;;  %v704_v3 = vor.u32 %v794_v1, %v703_v0  ;;  %v810_v4 = vld [vmem:[%s1115_s1 + $0xf4] sm:$0xf0]  ;;  %v705_v6 = vld [vmem:[%s1115_s1 + $0x78] sm:$0xf0] }
   0xe   : > { %v768_v7 = vor.u32 %v810_v4, %v767_v2  ;;  %v708_v8 = vor.u32 %v793_v5, %v705_v6  ;;  %v809_v9 = vld [vmem:[%s1115_s1 + $0xf4] sm:$0xf]  ;;  %v769_v10 = vld [vmem:[%s1115_s1 + $0xf8] sm:$0xf0]  ;;  %v695_v11 = vld [vmem:[%s1115_s1 + $0x60] sm:$0xf] }
   0xf   : > { %453 = vmatpush.bf16.msra.mxu0 %v704_v3  ;;  %v772_v12 = vor.u32 %v809_v9, %v769_v10  ;;  %v792_v13 = vld [vmem:[%s1115_s1 + $0x64] sm:$0xf0]  ;;  %v759_v14 = vld [vmem:[%s1115_s1 + $0xe0] sm:$0xf]  ;;  %v791_v18 = vld [vmem:[%s1115_s1 + $0x64] sm:$0xf] }
  0x10   : > { %v808_v15 = vld [vmem:[%s1115_s1 + $0xe4] sm:$0xf0]  ;;  %467 = vmatpush.bf16.msra.mxu1 %v768_v7  ;;  %481 = vmatpush.bf16.msra.mxu2 %v708_v8  ;;  %v696_v16 = vor.u32 %v792_v13, %v695_v11  ;;  %v697_v19 = vld [vmem:[%s1115_s1 + $0x68] sm:$0xf0]  ;;  %v807_v20 = vld [vmem:[%s1115_s1 + $0xe4] sm:$0xf] }
  0x11   : > { %v760_v17 = vor.u32 %v808_v15, %v759_v14  ;;  %495 = vmatpush.bf16.msra.mxu3 %v772_v12  ;;  %v700_v21 = vor.u32 %v791_v18, %v697_v19  ;;  %v761_v22 = vld [vmem:[%s1115_s1 + $0xe8] sm:$0xf0]  ;;  %v687_v23 = vld [vmem:[%s1115_s1 + $0x50] sm:$0xf]  ;;  %v790_v24 = vld [vmem:[%s1115_s1 + $0x54] sm:$0xf0] }
  0x12   : > { %v764_v25 = vor.u32 %v807_v20, %v761_v22  ;;  %v751_v26 = vld [vmem:[%s1115_s1 + $0xd0] sm:$0xf]  ;;  %v806_v27 = vld [vmem:[%s1115_s1 + $0xd4] sm:$0xf0]  ;;  %v789_v28 = vld [vmem:[%s1115_s1 + $0x54] sm:$0xf]  ;;  %v688_v29 = vor.u32 %v790_v24, %v687_v23 }
  0x13   : > { %454 = vmatpush.bf16.msra.mxu0 %v696_v16  ;;  %v689_v30 = vld [vmem:[%s1115_s1 + $0x58] sm:$0xf0]  ;;  %v805_v31 = vld [vmem:[%s1115_s1 + $0xd4] sm:$0xf]  ;;  %v752_v33 = vor.u32 %v806_v27, %v751_v26  ;;  %v679_v35 = vld [vmem:[%s1115_s1 + $0x40] sm:$0xf] }
  0x14   : > { %v753_v32 = vld [vmem:[%s1115_s1 + $0xd8] sm:$0xf0]  ;;  %468 = vmatpush.bf16.msra.mxu1 %v760_v17  ;;  %482 = vmatpush.bf16.msra.mxu2 %v700_v21  ;;  %v692_v34 = vor.u32 %v789_v28, %v689_v30  ;;  %v788_v36 = vld [vmem:[%s1115_s1 + $0x44] sm:$0xf0]  ;;  %v743_v37 = vld [vmem:[%s1115_s1 + $0xc0] sm:$0xf] }
  0x15   : > { %496 = vmatpush.bf16.msra.mxu3 %v764_v25  ;;  %v756_v38 = vor.u32 %v805_v31, %v753_v32  ;;  %v804_v39 = vld [vmem:[%s1115_s1 + $0xc4] sm:$0xf0]  ;;  %v787_v40 = vld [vmem:[%s1115_s1 + $0x44] sm:$0xf]  ;;  %v681_v41 = vld [vmem:[%s1115_s1 + $0x48] sm:$0xf0]  ;;  %v680_v44 = vor.u32 %v788_v36, %v679_v35 }
  0x16   : > { %v803_v42 = vld [vmem:[%s1115_s1 + $0xc4] sm:$0xf]  ;;  %v745_v43 = vld [vmem:[%s1115_s1 + $0xc8] sm:$0xf0]  ;;  %v744_v45 = vor.u32 %v804_v39, %v743_v37  ;;  %v684_v46 = vor.u32 %v787_v40, %v681_v41  ;;  %v671_v47 = vld [vmem:[%s1115_s1 + $0x30] sm:$0xf] }
  0x17   : > { %455 = vmatpush.bf16.msra.mxu0 %v688_v29  ;;  %v786_v48 = vld [vmem:[%s1115_s1 + $0x34] sm:$0xf0]  ;;  %v735_v49 = vld [vmem:[%s1115_s1 + $0xb0] sm:$0xf]  ;;  %v748_v50 = vor.u32 %v803_v42, %v745_v43  ;;  %v785_v52 = vld [vmem:[%s1115_s1 + $0x34] sm:$0xf] }
  0x18   : > { %469 = vmatpush.bf16.msra.mxu1 %v752_v33  ;;  %483 = vmatpush.bf16.msra.mxu2 %v692_v34  ;;  %v802_v51 = vld [vmem:[%s1115_s1 + $0xb4] sm:$0xf0]  ;;  %v673_v53 = vld [vmem:[%s1115_s1 + $0x38] sm:$0xf0]  ;;  %v801_v54 = vld [vmem:[%s1115_s1 + $0xb4] sm:$0xf]  ;;  %v672_v56 = vor.u32 %v786_v48, %v671_v47 }
  0x19   : > { %497 = vmatpush.bf16.msra.mxu3 %v756_v38  ;;  %v737_v55 = vld [vmem:[%s1115_s1 + $0xb8] sm:$0xf0]  ;;  %v736_v57 = vor.u32 %v802_v51, %v735_v49  ;;  %v676_v58 = vor.u32 %v785_v52, %v673_v53  ;;  %v663_v59 = vld [vmem:[%s1115_s1 + $0x20] sm:$0xf]  ;;  %v784_v60 = vld [vmem:[%s1115_s1 + $0x24] sm:$0xf0] }
  0x1a   : > { %v727_v61 = vld [vmem:[%s1115_s1 + $0xa0] sm:$0xf]  ;;  %v740_v62 = vor.u32 %v801_v54, %v737_v55  ;;  %v800_v63 = vld [vmem:[%s1115_s1 + $0xa4] sm:$0xf0]  ;;  %v783_v0 = vld [vmem:[%s1115_s1 + $0x24] sm:$0xf]  ;;  %v664_v4 = vor.u32 %v784_v60, %v663_v59 }
  0x1b   : > { %456 = vmatpush.bf16.msra.mxu0 %v680_v44  ;;  %v665_v1 = vld [vmem:[%s1115_s1 + $0x28] sm:$0xf0]  ;;  %v799_v2 = vld [vmem:[%s1115_s1 + $0xa4] sm:$0xf]  ;;  %v655_v5 = vld [vmem:[%s1115_s1 + $0x10] sm:$0xf]  ;;  %v728_v6 = vor.u32 %v800_v63, %v727_v61 }
  0x1c   : > { %470 = vmatpush.bf16.msra.mxu1 %v744_v45  ;;  %484 = vmatpush.bf16.msra.mxu2 %v684_v46  ;;  %v729_v3 = vld [vmem:[%s1115_s1 + $0xa8] sm:$0xf0]  ;;  %v668_v7 = vor.u32 %v783_v0, %v665_v1  ;;  %v782_v8 = vld [vmem:[%s1115_s1 + $0x14] sm:$0xf0]  ;;  %v719_v9 = vld [vmem:[%s1115_s1 + $0x90] sm:$0xf] }
  0x1d   : > { %498 = vmatpush.bf16.msra.mxu3 %v748_v50  ;;  %v798_v10 = vld [vmem:[%s1115_s1 + $0x94] sm:$0xf0]  ;;  %v732_v11 = vor.u32 %v799_v2, %v729_v3  ;;  %v781_v12 = vld [vmem:[%s1115_s1 + $0x14] sm:$0xf]  ;;  %v657_v13 = vld [vmem:[%s1115_s1 + $0x18] sm:$0xf0]  ;;  %v656_v16 = vor.u32 %v782_v8, %v655_v5 }
  0x1e   : > { %v797_v14 = vld [vmem:[%s1115_s1 + $0x94] sm:$0xf]  ;;  %v721_v15 = vld [vmem:[%s1115_s1 + $0x98] sm:$0xf0]  ;;  %v647_v17 = vld [vmem:[%s1115_s1] sm:$0xf]  ;;  %v720_v18 = vor.u32 %v798_v10, %v719_v9  ;;  %v660_v19 = vor.u32 %v781_v12, %v657_v13 }
  0x1f   : > { %457 = vmatpush.bf16.msra.mxu0 %v672_v56  ;;  %v780_v20 = vld [vmem:[%s1115_s1 + $0x4] sm:$0xf0]  ;;  %v711_v21 = vld [vmem:[%s1115_s1 + $0x80] sm:$0xf]  ;;  %s1123_s5 = smov (!%p214_p4, %s631_s5), 3  ;;  %v724_v22 = vor.u32 %v797_v14, %v721_v15 }
  0x20   : > { %471 = vmatpush.bf16.msra.mxu1 %v736_v57  ;;  %485 = vmatpush.bf16.msra.mxu2 %v676_v58  ;;  %v796_v23 = vld [vmem:[%s1115_s1 + $0x84] sm:$0xf0]  ;;  %v779_v24 = vld [vmem:[%s1115_s1 + $0x4] sm:$0xf]  ;;  %v649_v25 = vld [vmem:[%s1115_s1 + $0x8] sm:$0xf0]  ;;  %v648_v28 = vor.u32 %v780_v20, %v647_v17 }
  0x21   : > { %499 = vmatpush.bf16.msra.mxu3 %v740_v62  ;;  %v795_v26 = vld [vmem:[%s1115_s1 + $0x84] sm:$0xf]  ;;  %v713_v27 = vld [vmem:[%s1115_s1 + $0x88] sm:$0xf0]  ;;  %s775_s29 = sshll.u32 %s1123_s5, 3  ;;  %v712_v29 = vor.u32 %v796_v23, %v711_v21  ;;  %v652_v30 = vor.u32 %v779_v24, %v649_v25  ;;  %s776_s9 = sshll.u32 %s1123_s5, 4 }
  0x22   : > { %s218_s6 = scalar_lea.vmem %s1114_s0, %s775_s29  ;;  %v716_v34 = vor.u32 %v795_v26, %v713_v27  ;;  %v277_v38 = vld [vmem:[%s1116_s2] sm:$0x3]  ;;  %s240_s12 = scalar_lea.vmem %s1117_s3, %s776_s9 }
  0x23   : > { %458 = vmatpush.bf16.msra.mxu0 %v664_v4  ;;  %v639_v31 = vld [vmem:[%s218_s6] sm:$0xf]  ;;  %v778_v32 = vld [vmem:[%s218_s6 + $0x4] sm:$0xf0]  ;;  %v777_v33 = vld [vmem:[%s218_s6 + $0x4] sm:$0xf] }
  0x24   : > { %472 = vmatpush.bf16.msra.mxu1 %v728_v6  ;;  %486 = vmatpush.bf16.msra.mxu2 %v668_v7  ;;  %v641_v35 = vld [vmem:[%s218_s6 + $0x8] sm:$0xf0]  ;;  %v640_v36 = vor.u32 %v778_v32, %v639_v31  ;;  %v279_v39 = vperm.slane %v277_v38, 0  ;;  %v280_v44 = vperm.slane %v277_v38, 1 }
  0x25   : > { %500 = vmatpush.bf16.msra.mxu3 %v732_v11  ;;  %v644_v37 = vor.u32 %v777_v33, %v641_v35 }
  0x27   : > { %459 = vmatpush.bf16.msra.mxu0 %v656_v16 }
  0x28   : > { %473 = vmatpush.bf16.msra.mxu1 %v720_v18  ;;  %487 = vmatpush.bf16.msra.mxu2 %v660_v19 }
  0x29   : > { %501 = vmatpush.bf16.msra.mxu3 %v724_v22 }
  0x2b   : > { %460 = vmatpush.bf16.msra.mxu0 %v648_v28 }
  0x2c   : > { %474 = vmatpush.bf16.msra.mxu1 %v712_v29  ;;  %488 = vmatpush.bf16.msra.mxu2 %v652_v30 }
  0x2d   : > { %502 = vmatpush.bf16.msra.mxu3 %v716_v34 }
  0x2e   : > { %461 = vmatmul.bf16.vlgmr.msra.gmra.mxu0 %v640_v36 }
  0x2f   : > { %475 = vmatmul.bf16.vlgmr.msra.gmra.mxu1 %v644_v37  ;;  %489 = vmatmul.bf16.vlgmr.msra.gmra.mxu2 %v640_v36 }
  0x30   : > { %503 = vmatmul.bf16.vlgmr.msra.gmra.mxu3 %v644_v37 }
  0xab   : > { %v462_v40 = vpop.f32.mrf.mxu0 }
  0xac   : > { %v463_v41 = vadd.f32 %v462_v40, %v279_v39  ;;  %v476_v42 = vpop.f32.mrf.mxu1 }
  0xae   : > { %v477_v43 = vadd.f32 %v476_v42, %v463_v41 }
  0xb0   : > { %509 = vst [vmem:[%s240_s12] sm:$0xff] %v477_v43 }
  0xb2   : > { %v490_v45 = vpop.f32.mrf.mxu2 }
  0xb3   : > { %v491_v46 = vadd.f32 %v490_v45, %v280_v44  ;;  %v504_v47 = vpop.f32.mrf.mxu3  ;;  %v464_v48 = vpop.f32.mrf.mxu0 }
  0xb4   : > { %v465_v49 = vadd.f32 %v464_v48, %v279_v39  ;;  %v478_v51 = vpop.f32.mrf.mxu1 }
  0xb5   : > { %v505_v50 = vadd.f32 %v504_v47, %v491_v46 }
  0xb6   : > { %v479_v52 = vadd.f32 %v478_v51, %v465_v49 }
  0xb7   : > { %510 = vst [vmem:[%s240_s12 + $0x8] sm:$0xff] %v505_v50 }
  0xb8   : > { %511 = vst [vmem:[%s240_s12 + $0x10] sm:$0xff] %v479_v52 }
  0xba   : > { %v492_v53 = vpop.f32.mrf.mxu2 }
  0xbb   : > { %v493_v54 = vadd.f32 %v492_v53, %v280_v44  ;;  %v506_v55 = vpop.f32.mrf.mxu3 }
  0xbd   : > { %v507_v56 = vadd.f32 %v506_v55, %v493_v54 }
  0xbf   : > { %512 = vst [vmem:[%s240_s12 + $0x18] sm:$0xff] %v507_v56 }
  0xc0 PF: > { %s13_s14 = sadd.s32 1, %s857_s14   ;;  %s1118_s12 = smov %s853_s13 }
  0xc1   : > { %p10_p5 = scmp.ge.s32.totalorder %s13_s14, 4   ;;  %s1119_s13 = smov %s1121_s15 }
  0xc3   :  { %12 = sbr.rel (!%p10_p5) target bundleno = 2 (0x2), region = 68 }

</bundles_post_ra>
